<compile_context>
chip_gen: v7x
topology: tpu7x:2x2x1
jax: 0.10.0
libtpu: 0.0.40
codegen_flags: <defaults>
</compile_context>

<pallas_src>
import functools

import jax
import jax.numpy as jnp
from jax.experimental import pallas as pl
from jax.experimental.pallas import tpu as pltpu

LANE = 128


def _round_up(x, m):
    return ((x + m - 1) // m) * m


@functools.lru_cache(maxsize=None)
def _device_kind():
    try:
        return jax.devices()[0].device_kind.lower()
    except Exception:
        return ""


def _num_tensorcores():
    # v7x exposes 2 TensorCores per chip; v5e / v6e have 1.  On 1-TC chips a
    # 2-way split only adds a second init/epilogue, so keep it at 1 there.
    kind = _device_kind()
    return 2 if ("v7" in kind or "7x" in kind) else 1


def _base_tile_rows():
    # v7x HBM (~3.2 TB/s) makes a 512 KiB grid step comparable to the ~0.35 us
    # per-step pipeline overhead -> use bigger tiles there.  1024 rows is
    # already roofline-saturating on v5e/v6e.
    kind = _device_kind()
    return 2048 if ("v7" in kind or "7x" in kind) else 1024


def _make_loss_sums_kernel(chunks, blocks_total, tail_rows):
    """Build the per-step kernel; all tiling constants are baked in (static)."""
    has_tail = tail_rows > 0

    def kernel(pred_ref, tgt_ref, sq_ref, ab_ref):
        i = pl.program_id(0)   # TensorCore split axis ("parallel")
        j = pl.program_id(1)   # streaming reduction axis ("arbitrary")

        # Output blocks (index_map depends only on i) stay resident in VMEM
        # across the whole j axis, so we accumulate directly into them.
        @pl.when(j == 0)
        def _init():
            sq_ref[...] = jnp.zeros_like(sq_ref)
            ab_ref[...] = jnp.zeros_like(ab_ref)

        d = pred_ref[...].astype(jnp.float32) - tgt_ref[...].astype(jnp.float32)

        def _accumulate(dv):
            # Fold each (8, LANE) slab (exactly one vreg) into the (8, LANE)
            # accumulator: pure VALU vreg adds, no XLU, minimal vld/vst.
            sq_ref[...] += jnp.sum((dv * dv).reshape(-1, 8, LANE), axis=0)
            ab_ref[...] += jnp.sum(jnp.abs(dv).reshape(-1, 8, LANE), axis=0)

        if has_tail:
            # Only the globally-last block can read past the logical end of
            # the array (Pallas leaves the out-of-bounds part of a partial
            # input block undefined); mask by sublane index before use so the
            # steady-state blocks pay no masking cost.
            is_tail = (i * chunks + j) == (blocks_total - 1)

            @pl.when(is_tail)
            def _masked():
                row = jax.lax.broadcasted_iota(jnp.int32, d.shape, 0)
                _accumulate(jnp.where(row < tail_rows, d, 0.0))

            @pl.when(jnp.logical_not(is_tail))
            def _plain():
                _accumulate(d)
        else:
            _accumulate(d)

    return kernel


@jax.jit
def _loss_sums_jit(pred, target):
    """One streaming HBM pass -> (sum((p-t)^2), sum(|p-t|)) as f32 scalars."""
    n = pred.size
    p = pred.reshape(-1)
    t = target.reshape(-1)

    # reshape (n,) -> (rows, LANE) is a free bitcast when n % LANE == 0 (the
    # common case for NN tensors).  Row raggedness w.r.t. the tile is masked
    # *inside* the kernel, so no tile-sized padded copy is ever made.
    # TODO(synk): element counts not a multiple of 128 still pay one minimal
    # pad copy; a 1-D-block kernel would remove it.
    if n % LANE != 0:
        pad = LANE - (n % LANE)
        p = jnp.pad(p, (0, pad))
        t = jnp.pad(t, (0, pad))
    rows = p.size // LANE
    p2 = p.reshape(rows, LANE)
    t2 = t.reshape(rows, LANE)

    # dtype-aware tiling: sublane alignment 8/16/32 for 4/2/1-byte dtypes and
    # proportionally more rows per tile for narrow dtypes (constant bytes per
    # grid step).  Inputs keep their original dtype; the cast happens in-VPU.
    itemsize = int(min(pred.dtype.itemsize, target.dtype.itemsize))
    pack = max(1, 4 // itemsize)
    row_align = 8 * pack
    max_rows = _base_tile_rows() * pack
    tile = max(row_align, min(max_rows, _round_up(rows, row_align)))

    blocks_total = -(-rows // tile)
    n_splits = _num_tensorcores()
    if blocks_total % n_splits != 0:
        n_splits = 1                    # keep the grid rectangular and exact
    chunks = blocks_total // n_splits
    tail_rows = rows - (blocks_total - 1) * tile if rows % tile else 0

    kernel = _make_loss_sums_kernel(chunks, blocks_total, tail_rows)

    cost = pl.CostEstimate(
        flops=5 * rows * LANE,
        transcendentals=0,
        bytes_accessed=rows * LANE * (pred.dtype.itemsize + target.dtype.itemsize)
        + 2 * n_splits * 8 * LANE * 4,
    )

    sq_part, ab_part = pl.pallas_call(
        kernel,
        out_shape=(
            jax.ShapeDtypeStruct((n_splits * 8, LANE), jnp.float32),
            jax.ShapeDtypeStruct((n_splits * 8, LANE), jnp.float32),
        ),
        grid_spec=pltpu.PrefetchScalarGridSpec(
            num_scalar_prefetch=0,
            grid=(n_splits, chunks),
            in_specs=[
                pl.BlockSpec((tile, LANE), lambda i, j: (i * chunks + j, 0)),
                pl.BlockSpec((tile, LANE), lambda i, j: (i * chunks + j, 0)),
            ],
            out_specs=[
                pl.BlockSpec((8, LANE), lambda i, j: (i, 0)),
                pl.BlockSpec((8, LANE), lambda i, j: (i, 0)),
            ],
        ),
        compiler_params=pltpu.CompilerParams(
            # TODO(synk): confirm via xprof that axis 0 lands on both v7x
            # TensorCores; switch to pltpu.CORE_PARALLEL if it serializes.
            dimension_semantics=("parallel", "arbitrary"),
            vmem_limit_bytes=32 * 1024 * 1024,
        ),
        cost_estimate=cost,
    )(p2, t2)

    # Per-split lane-dense (8,128) partial accumulators -> scalar totals.
    return jnp.sum(sq_part), jnp.sum(ab_part)


def _loss_sums(pred, target):
    """Returns (sum_sq_diff, sum_abs_diff, n_elements) via one Pallas pass."""
    sq, ab = _loss_sums_jit(pred, target)
    return sq, ab, pred.size


class BaseLoss:
    """JAX mirror of the PyTorch BaseLoss module.

    weights:   dict[name -> float weight]
    functions: dict[name -> callable(batch) -> scalar jnp loss]
    forward(batch) -> (mixed_loss, {name: python float, ..., 'mixed': float})
    """

    def __init__(self):
        # Abstract base: subclasses / callers populate these registries.
        self.weights = {}
        self.functions = {}

    def forward(self, batch):
        term_vals = {}
        mixed = jnp.float32(0.0)
        for t, w in self.weights.items():
            loss = self.functions[t](batch)
            mixed = mixed + jnp.float32(w) * loss
            term_vals[t] = loss
        # Single device->host sync (mirrors .item() per term, but batched so
        # kernel launches are not serialized by per-term host round trips).
        mixed, term_vals = jax.block_until_ready((mixed, term_vals))
        losses = {t: float(v) for t, v in term_vals.items()}
        losses['mixed'] = float(mixed)
        return (mixed, losses)

    def __call__(self, batch):
        return self.forward(batch)

    def report(self):
        return


def _make_mse_and_l1_fns():
    """Example loss terms.  Both share ONE Pallas pass over (pred, target).

    Memoization holds references to the cached arrays and compares with `is`,
    so Python id() reuse after GC can never alias a stale entry to a new batch.
    """
    cache = {"pred": None, "target": None, "sums": None}

    def _shared_sums(batch):
        pred, target = batch['pred'], batch['target']
        if cache["pred"] is not pred or cache["target"] is not target:
            cache["pred"], cache["target"] = pred, target
            cache["sums"] = _loss_sums(pred, target)
        return cache["sums"]

    def mse_fn(batch):
        sq, _, n = _shared_sums(batch)
        return sq / jnp.float32(n)

    def l1_fn(batch):
        _, ab, n = _shared_sums(batch)
        return ab / jnp.float32(n)

    return mse_fn, l1_fn


if __name__ == "__main__":
    key = jax.random.PRNGKey(0)
    k1, k2 = jax.random.split(key)

    # layout: NCHW, batch=2, channels=4, spatial=16x16 -> 2048 elems
    pred = jax.random.normal(k1, (2, 4, 16, 16), dtype=jnp.float32)
    target = jax.random.normal(k2, (2, 4, 16, 16), dtype=jnp.float32)
    batch = {'pred': pred, 'target': target}

    loss_module = BaseLoss()
    mse_fn, l1_fn = _make_mse_and_l1_fns()
    loss_module.weights = {'mse': 1.0, 'l1': 0.5}
    loss_module.functions = {'mse': mse_fn, 'l1': l1_fn}

    mixed, losses = loss_module(batch)
    mixed = jax.block_until_ready(mixed)

    # Reference check against plain JAX.
    ref_mse = float(jnp.mean((pred - target) ** 2))
    ref_l1 = float(jnp.mean(jnp.abs(pred - target)))
    ref_mixed = 1.0 * ref_mse + 0.5 * ref_l1
    assert abs(losses['mse'] - ref_mse) < 1e-4
    assert abs(losses['l1'] - ref_l1) < 1e-4
    assert abs(float(mixed) - ref_mixed) < 1e-4

    # Extra coverage for the kernel's tail-mask, multi-block, pad-fallback and
    # dtype-aware paths (all still small & deterministic).
    def _check(shape, dtype, seed, tol=1e-4):
        ka, kb = jax.random.split(jax.random.PRNGKey(seed))
        a = jax.random.normal(ka, shape, dtype=jnp.float32).astype(dtype)
        b = jax.random.normal(kb, shape, dtype=jnp.float32).astype(dtype)
        sq, ab, cnt = _loss_sums(a, b)
        sq, ab = jax.block_until_ready((sq, ab))
        d = a.astype(jnp.float32) - b.astype(jnp.float32)
        ref_sq = float(jnp.sum(d * d))
        ref_ab = float(jnp.sum(jnp.abs(d)))
        assert abs(float(sq) - ref_sq) < tol * max(1.0, abs(ref_sq)), (shape, dtype)
        assert abs(float(ab) - ref_ab) < tol * max(1.0, abs(ref_ab)), (shape, dtype)
        assert cnt == a.size

    _check((2, 3, 16, 16), jnp.float32, 1)               # ragged rows -> in-kernel mask
    _check((2, 8, 128, 128), jnp.float32, 2)             # multi grid-step accumulation
    _check((3, 3, 7, 5), jnp.float32, 3)                 # n % 128 != 0 -> pad fallback
    _check((2, 4, 16, 16), jnp.bfloat16, 4, tol=1e-3)    # bf16 inputs, 16-row alignment

    print("KERNEL_OK")
</pallas_src>

<mosaic_0001>
module attributes {stable_mosaic.version = 11 : i64} {
  func.func @kernel(%arg0: i32, %arg1: i32, %arg2: memref<16x128xf32, #tpu.memory_space<vmem>>, %arg3: memref<16x128xf32, #tpu.memory_space<vmem>>, %arg4: memref<8x128xf32, #tpu.memory_space<vmem>>, %arg5: memref<8x128xf32, #tpu.memory_space<vmem>>) attributes {dimension_semantics = [#tpu.dimension_semantics<parallel>, #tpu.dimension_semantics<arbitrary>], iteration_bounds = array<i64: 1, 1>, scalar_prefetch = 0 : i64, scratch_operands = 0 : i64, tpu.core_type = #tpu.core_type<tc>, window_params = [{transform_indices = @transform_0, window_bounds = array<i64: 16, 128>}, {transform_indices = @transform_1, window_bounds = array<i64: 16, 128>}, {transform_indices = @transform_2, window_bounds = array<i64: 8, 128>}, {transform_indices = @transform_3, window_bounds = array<i64: 8, 128>}]} {
    %c0_i32 = arith.constant 0 : i32
    %0 = arith.cmpi eq, %arg1, %c0_i32 : i32
    %1 = arith.extui %0 : i1 to i32
    %c0_i32_0 = arith.constant 0 : i32
    %2 = arith.cmpi ne, %1, %c0_i32_0 : i32
    scf.if %2 {
      %cst_13 = arith.constant 0.000000e+00 : f32
      %18 = vector.broadcast %cst_13 : f32 to vector<8x128xf32>
      %c0_14 = arith.constant 0 : index
      %c0_15 = arith.constant 0 : index
      %19 = vector.load %arg4[%c0_14, %c0_15] : memref<8x128xf32, #tpu.memory_space<vmem>>, vector<8x128xf32>
      tpu.vector_store %arg4[%c0_14, %c0_15], %18 {strides = array<i32>} : memref<8x128xf32, #tpu.memory_space<vmem>>, vector<8x128xf32>,
      %cst_16 = arith.constant 0.000000e+00 : f32
      %20 = vector.broadcast %cst_16 : f32 to vector<8x128xf32>
      %c0_17 = arith.constant 0 : index
      %c0_18 = arith.constant 0 : index
      %21 = vector.load %arg5[%c0_17, %c0_18] : memref<8x128xf32, #tpu.memory_space<vmem>>, vector<8x128xf32>
      tpu.vector_store %arg5[%c0_17, %c0_18], %20 {strides = array<i32>} : memref<8x128xf32, #tpu.memory_space<vmem>>, vector<8x128xf32>,
    } else {
    }
    %c0 = arith.constant 0 : index
    %c0_1 = arith.constant 0 : index
    %3 = vector.load %arg2[%c0, %c0_1] : memref<16x128xf32, #tpu.memory_space<vmem>>, vector<16x128xf32>
    %c0_2 = arith.constant 0 : index
    %c0_3 = arith.constant 0 : index
    %4 = vector.load %arg3[%c0_2, %c0_3] : memref<16x128xf32, #tpu.memory_space<vmem>>, vector<16x128xf32>
    %5 = arith.subf %3, %4 : vector<16x128xf32>
    %c0_4 = arith.constant 0 : index
    %c0_5 = arith.constant 0 : index
    %6 = vector.load %arg4[%c0_4, %c0_5] : memref<8x128xf32, #tpu.memory_space<vmem>>, vector<8x128xf32>
    %7 = arith.mulf %5, %5 : vector<16x128xf32>
    %8 = vector.shape_cast %7 : vector<16x128xf32> to vector<2x8x128xf32>
    %cst = arith.constant dense<0.000000e+00> : vector<8x128xf32>
    %9 = vector.multi_reduction <add>, %8, %cst [0] : vector<2x8x128xf32> to vector<8x128xf32>
    %10 = arith.addf %6, %9 : vector<8x128xf32>
    %c0_6 = arith.constant 0 : index
    %c0_7 = arith.constant 0 : index
    %11 = vector.load %arg4[%c0_6, %c0_7] : memref<8x128xf32, #tpu.memory_space<vmem>>, vector<8x128xf32>
    tpu.vector_store %arg4[%c0_6, %c0_7], %10 {strides = array<i32>} : memref<8x128xf32, #tpu.memory_space<vmem>>, vector<8x128xf32>,
    %c0_8 = arith.constant 0 : index
    %c0_9 = arith.constant 0 : index
    %12 = vector.load %arg5[%c0_8, %c0_9] : memref<8x128xf32, #tpu.memory_space<vmem>>, vector<8x128xf32>
    %13 = math.absf %5 : vector<16x128xf32>
    %14 = vector.shape_cast %13 : vector<16x128xf32> to vector<2x8x128xf32>
    %cst_10 = arith.constant dense<0.000000e+00> : vector<8x128xf32>
    %15 = vector.multi_reduction <add>, %14, %cst_10 [0] : vector<2x8x128xf32> to vector<8x128xf32>
    %16 = arith.addf %12, %15 : vector<8x128xf32>
    %c0_11 = arith.constant 0 : index
    %c0_12 = arith.constant 0 : index
    %17 = vector.load %arg5[%c0_11, %c0_12] : memref<8x128xf32, #tpu.memory_space<vmem>>, vector<8x128xf32>
    tpu.vector_store %arg5[%c0_11, %c0_12], %16 {strides = array<i32>} : memref<8x128xf32, #tpu.memory_space<vmem>>, vector<8x128xf32>,
    return
  }
  func.func @transform_0(%arg0: i32, %arg1: i32) -> (i32, i32) {
    %c1_i32 = arith.constant 1 : i32
    %0 = arith.muli %arg0, %c1_i32 : i32
    %1 = arith.addi %0, %arg1 : i32
    %c0_i32 = arith.constant 0 : i32
    %c0_i32_0 = arith.constant 0 : i32
    return %1, %c0_i32 : i32, i32
  }
  func.func @transform_1(%arg0: i32, %arg1: i32) -> (i32, i32) {
    %c1_i32 = arith.constant 1 : i32
    %0 = arith.muli %arg0, %c1_i32 : i32
    %1 = arith.addi %0, %arg1 : i32
    %c0_i32 = arith.constant 0 : i32
    %c0_i32_0 = arith.constant 0 : i32
    return %1, %c0_i32 : i32, i32
  }
  func.func @transform_2(%arg0: i32, %arg1: i32) -> (i32, i32) {
    %c0_i32 = arith.constant 0 : i32
    %c0_i32_0 = arith.constant 0 : i32
    return %arg0, %c0_i32 : i32, i32
  }
  func.func @transform_3(%arg0: i32, %arg1: i32) -> (i32, i32) {
    %c0_i32 = arith.constant 0 : i32
    %c0_i32_0 = arith.constant 0 : i32
    return %arg0, %c0_i32 : i32, i32
  }
}

</mosaic_0001>

<bundles_post_ra>
// kernel: _loss_sums_jit.1
= control target key start
LH: loop header
LB: loop body
LE: loop exit
PB: predicated region body
PF: predicated region fallthrough
CT: control target
= control target key end

     0   :  { %s140_s0 = inlined_call_operand.vmem [shape: f32[16,128], index: 0, kind: input, shape index: {}]   ;;  %s141_s1 = inlined_call_operand.vmem [shape: f32[16,128], index: 1, kind: input, shape index: {}]   ;;  %s142_s2 = inlined_call_operand.vmem [shape: f32[8,128], index: 2, kind: output, shape index: {0}]   ;;  %s143_s3 = inlined_call_operand.vmem [shape: f32[8,128], index: 3, kind: output, shape index: {1}]  }
   0x1   :  { %v63_v0 = vld [vmem:[%s140_s0] sm:$0xff]  ;;  %v64_v1 = vld [vmem:[%s140_s0 + $0x8] sm:$0xff] }
   0x2   :  { %v65_v2 = vld [vmem:[%s141_s1] sm:$0xff]  ;;  %v66_v3 = vld [vmem:[%s141_s1 + $0x8] sm:$0xff] }
   0x3   :  { %v67_v4 = vsub.f32 %v63_v0, %v65_v2  ;;  %v68_v5 = vsub.f32 %v64_v1, %v66_v3 }
   0x5   :  { %v70_v6 = vmul.f32 %v67_v4, %v67_v4  ;;  %v76_v7 = vand.u32 2147483647, %v67_v4  ;;  %v71_v8 = vmul.f32 %v68_v5, %v68_v5  ;;  %v77_v9 = vand.u32 2147483647, %v68_v5 }
   0x7   :  { %v72_v10 = vadd.f32 %v71_v8, %v70_v6  ;;  %v78_v11 = vadd.f32 %v77_v9, %v76_v7 }
   0x9   :  { %74 = vst [vmem:[%s142_s2] sm:$0xff] %v72_v10  ;;  %80 = vst [vmem:[%s143_s3] sm:$0xff] %v78_v11 }

</bundles_post_ra>
